<compile_context>
chip_gen: v6e
topology: v6e:2x2x1
jax: 0.10.0
libtpu: 0.0.40
codegen_flags: <defaults>
</compile_context>

<pallas_src>
import functools

import jax
import jax.numpy as jnp
from jax import lax
from jax.experimental import pallas as pl
from jax.experimental.pallas import tpu as pltpu

_LANE = 128
_SUBLANE = 8
_MAX_BLOCK_ROWS = 1024  # (1024,128) f32 block = 512 KiB -> ~2 MiB with 2 inputs double-buffered


def _huber_kernel(delta_ref, yp_ref, y_ref, acc_ref, *, tr, gs, n_total, need_mask):
    s = pl.program_id(1)

    @pl.when(s == 0)
    def _():
        acc_ref[...] = jnp.zeros_like(acc_ref)

    delta = delta_ref[0, 0]
    inv_delta = 1.0 / delta          # scalar, hoisted off the vector path
    d2 = delta * delta

    y_prim = yp_ref[...].astype(jnp.float32)   # upcast (if any) in-kernel, not in wrapper
    y = y_ref[...].astype(jnp.float32)

    t = 1.0 + (y - y_prim) * inv_delta
    # Keep sqrt(...)**2 literally (NaN for negative argument, matching torch).
    val = d2 * jnp.sqrt(t) ** 2 - 1.0

    if need_mask:
        # Mask out tail padding / out-of-range (clamped) blocks / garbage in
        # partial edge blocks.  Static Python branch: no cost when not needed.
        c = pl.program_id(0)
        blk = c * gs + s
        row_ids = blk * tr + lax.broadcasted_iota(jnp.int32, (tr, _LANE), 0)
        lane_ids = lax.broadcasted_iota(jnp.int32, (tr, _LANE), 1)
        full_rows = n_total // _LANE
        rem = n_total % _LANE
        mask = (row_ids < full_rows) | ((row_ids == full_rows) & (lane_ids < rem))
        val = jnp.where(mask, val, 0.0)

    # Per-step partial sums: pure VPU adds into the (8,128) accumulator block.
    acc_ref[...] += val.reshape(tr // _SUBLANE, _SUBLANE, _LANE).sum(axis=0)


def loss_huber(y_prim, y, delta):
    """Huber-style loss; y_prim and y are arbitrary same-shaped arrays."""
    assert y_prim.shape == y.shape
    n_total = y_prim.size
    itemsize = jnp.dtype(y_prim.dtype).itemsize

    # Flatten to a lane-dense slab.  Pad only the ragged tail (if any) so the
    # row count is a multiple of the sublane count; padded values are masked
    # out inside the kernel (no wrapper-side correction needed).
    chunk = _SUBLANE * _LANE
    padded = pl.cdiv(n_total, chunk) * chunk
    yp_flat = y_prim.reshape(-1)
    y_flat = y.reshape(-1)
    if padded != n_total:
        # TODO(synk): this tail pad still copies the array in XLA; a fully
        # copy-free path would need a separate remainder kernel.
        yp_flat = jnp.pad(yp_flat, (0, padded - n_total))
        y_flat = jnp.pad(y_flat, (0, padded - n_total))
    rows = padded // _LANE
    yp2 = yp_flat.reshape(rows, _LANE)
    y2 = y_flat.reshape(rows, _LANE)

    tr = min(_MAX_BLOCK_ROWS, rows)          # rows is a multiple of 8, so tr is too
    gr = pl.cdiv(rows, tr)                   # total row-blocks
    nc = 2 if gr >= 2 else 1                 # split across TensorCores (v7x); harmless elsewhere
    gs = pl.cdiv(gr, nc)                     # row-blocks per core
    need_mask = (nc * gs * tr * _LANE) != n_total

    def data_map(c, s):
        # Clamp so an over-provisioned (c, s) never indexes past the array;
        # the duplicate read is zeroed by the in-kernel mask.
        return (jnp.minimum(c * gs + s, gr - 1), 0)

    delta_arr = jnp.asarray(delta, jnp.float32).reshape(1, 1)

    kernel = functools.partial(
        _huber_kernel, tr=tr, gs=gs, n_total=n_total, need_mask=need_mask
    )

    partials = pl.pallas_call(
        kernel,
        out_shape=jax.ShapeDtypeStruct((nc * _SUBLANE, _LANE), jnp.float32),
        grid=(nc, gs),
        in_specs=[
            pl.BlockSpec(memory_space=pltpu.SMEM),        # delta scalar
            pl.BlockSpec((tr, _LANE), data_map),          # y_prim tiles
            pl.BlockSpec((tr, _LANE), data_map),          # y tiles
        ],
        out_specs=pl.BlockSpec((_SUBLANE, _LANE), lambda c, s: (c, 0)),
        compiler_params=pltpu.CompilerParams(
            dimension_semantics=("parallel", "arbitrary"),
            vmem_limit_bytes=32 * 1024 * 1024,
        ),
        cost_estimate=pl.CostEstimate(
            flops=6 * n_total,
            transcendentals=n_total,
            bytes_accessed=2 * n_total * itemsize + nc * _SUBLANE * _LANE * 4,
        ),
    )(delta_arr, yp2, y2)

    # Single small cross-lane reduction + mean outside the kernel.
    return jnp.sum(partials) / jnp.float32(n_total)


def loss_huber_ref(y_prim, y, delta):
    t = 1.0 + (y - y_prim) / delta
    return jnp.mean(delta ** 2 * jnp.sqrt(t) ** 2 - 1.0)


def _check(shape, delta, seed):
    k1, k2 = jax.random.split(jax.random.PRNGKey(seed))
    # Keep (y - y_prim)/delta > -1 so the sqrt argument stays non-negative
    # (otherwise both torch and this kernel produce NaN identically).
    y_prim = jax.random.uniform(k1, shape, dtype=jnp.float32, minval=-0.3, maxval=0.3)
    y = jax.random.uniform(k2, shape, dtype=jnp.float32, minval=-0.3, maxval=0.3)
    out = loss_huber(y_prim, y, delta)
    jax.block_until_ready(out)
    ref = loss_huber_ref(y_prim, y, delta)
    assert jnp.allclose(out, ref, rtol=1e-5, atol=1e-6), (shape, out, ref)


if __name__ == "__main__":
    # Primary small-shape test (NCHW-like regression tensors), exact tiling.
    _check((2, 4, 16, 16), delta=1.0, seed=0)
    # Ragged size (not a multiple of 128) -> exercises the in-kernel mask.
    _check((3, 5, 7, 11), delta=0.7, seed=0)
    # Multi-block grid with the 2-way core split + partial edge block.
    _check((2, 4, 136, 128), delta=1.3, seed=0)
    print("KERNEL_OK")
</pallas_src>

<mosaic_0001>
module attributes {stable_mosaic.version = 11 : i64} {
  func.func @_huber_kernel(%arg0: i32, %arg1: i32, %arg2: memref<1x1xf32, #tpu.memory_space<smem>>, %arg3: memref<16x128xf32, #tpu.memory_space<vmem>>, %arg4: memref<16x128xf32, #tpu.memory_space<vmem>>, %arg5: memref<8x128xf32, #tpu.memory_space<vmem>>) attributes {dimension_semantics = [#tpu.dimension_semantics<parallel>, #tpu.dimension_semantics<arbitrary>], iteration_bounds = array<i64: 1, 1>, scalar_prefetch = 0 : i64, scratch_operands = 0 : i64, tpu.core_type = #tpu.core_type<tc>, window_params = [{transform_indices = @transform_0, window_bounds = array<i64: 1, 1>}, {transform_indices = @transform_1, window_bounds = array<i64: 16, 128>}, {transform_indices = @transform_2, window_bounds = array<i64: 16, 128>}, {transform_indices = @transform_3, window_bounds = array<i64: 8, 128>}]} {
    %c0_i32 = arith.constant 0 : i32
    %0 = arith.cmpi eq, %arg1, %c0_i32 : i32
    %1 = arith.extui %0 : i1 to i32
    %c0_i32_0 = arith.constant 0 : i32
    %2 = arith.cmpi ne, %1, %c0_i32_0 : i32
    scf.if %2 {
      %cst_13 = arith.constant 0.000000e+00 : f32
      %24 = vector.broadcast %cst_13 : f32 to vector<8x128xf32>
      %c0_14 = arith.constant 0 : index
      %c0_15 = arith.constant 0 : index
      %25 = vector.load %arg5[%c0_14, %c0_15] : memref<8x128xf32, #tpu.memory_space<vmem>>, vector<8x128xf32>
      tpu.vector_store %arg5[%c0_14, %c0_15], %24 {strides = array<i32>} : memref<8x128xf32, #tpu.memory_space<vmem>>, vector<8x128xf32>,
    } else {
    }
    %c0 = arith.constant 0 : index
    %c0_1 = arith.constant 0 : index
    %3 = memref.load %arg2[%c0, %c0_1] : memref<1x1xf32, #tpu.memory_space<smem>>
    %cst = arith.constant 1.000000e+00 : f32
    %4 = arith.divf %cst, %3 : f32
    %5 = arith.mulf %3, %3 : f32
    %c0_2 = arith.constant 0 : index
    %c0_3 = arith.constant 0 : index
    %6 = vector.load %arg3[%c0_2, %c0_3] : memref<16x128xf32, #tpu.memory_space<vmem>>, vector<16x128xf32>
    %c0_4 = arith.constant 0 : index
    %c0_5 = arith.constant 0 : index
    %7 = vector.load %arg4[%c0_4, %c0_5] : memref<16x128xf32, #tpu.memory_space<vmem>>, vector<16x128xf32>
    %8 = arith.subf %7, %6 : vector<16x128xf32>
    %9 = vector.broadcast %4 : f32 to vector<16x128xf32>
    %10 = arith.mulf %8, %9 : vector<16x128xf32>
    %cst_6 = arith.constant 1.000000e+00 : f32
    %11 = vector.broadcast %cst_6 : f32 to vector<16x128xf32>
    %12 = arith.addf %11, %10 : vector<16x128xf32>
    %13 = math.sqrt %12 : vector<16x128xf32>
    %14 = arith.mulf %13, %13 : vector<16x128xf32>
    %15 = vector.broadcast %5 : f32 to vector<16x128xf32>
    %16 = arith.mulf %15, %14 : vector<16x128xf32>
    %cst_7 = arith.constant 1.000000e+00 : f32
    %17 = vector.broadcast %cst_7 : f32 to vector<16x128xf32>
    %18 = arith.subf %16, %17 : vector<16x128xf32>
    %c0_8 = arith.constant 0 : index
    %c0_9 = arith.constant 0 : index
    %19 = vector.load %arg5[%c0_8, %c0_9] : memref<8x128xf32, #tpu.memory_space<vmem>>, vector<8x128xf32>
    %20 = vector.shape_cast %18 : vector<16x128xf32> to vector<2x8x128xf32>
    %cst_10 = arith.constant dense<0.000000e+00> : vector<8x128xf32>
    %21 = vector.multi_reduction <add>, %20, %cst_10 [0] : vector<2x8x128xf32> to vector<8x128xf32>
    %22 = arith.addf %19, %21 : vector<8x128xf32>
    %c0_11 = arith.constant 0 : index
    %c0_12 = arith.constant 0 : index
    %23 = vector.load %arg5[%c0_11, %c0_12] : memref<8x128xf32, #tpu.memory_space<vmem>>, vector<8x128xf32>
    tpu.vector_store %arg5[%c0_11, %c0_12], %22 {strides = array<i32>} : memref<8x128xf32, #tpu.memory_space<vmem>>, vector<8x128xf32>,
    return
  }
  func.func @transform_0(%arg0: i32, %arg1: i32) -> (i32, i32) {
    %c0_i32 = arith.constant 0 : i32
    %c0_i32_0 = arith.constant 0 : i32
    %c0_i32_1 = arith.constant 0 : i32
    return %c0_i32, %c0_i32_0 : i32, i32
  }
  func.func @transform_1(%arg0: i32, %arg1: i32) -> (i32, i32) {
    %c1_i32 = arith.constant 1 : i32
    %0 = arith.muli %arg0, %c1_i32 : i32
    %1 = arith.addi %0, %arg1 : i32
    %c0_i32 = arith.constant 0 : i32
    %2 = arith.minsi %1, %c0_i32 : i32
    %c0_i32_0 = arith.constant 0 : i32
    %c0_i32_1 = arith.constant 0 : i32
    return %2, %c0_i32_0 : i32, i32
  }
  func.func @transform_2(%arg0: i32, %arg1: i32) -> (i32, i32) {
    %c1_i32 = arith.constant 1 : i32
    %0 = arith.muli %arg0, %c1_i32 : i32
    %1 = arith.addi %0, %arg1 : i32
    %c0_i32 = arith.constant 0 : i32
    %2 = arith.minsi %1, %c0_i32 : i32
    %c0_i32_0 = arith.constant 0 : i32
    %c0_i32_1 = arith.constant 0 : i32
    return %2, %c0_i32_0 : i32, i32
  }
  func.func @transform_3(%arg0: i32, %arg1: i32) -> (i32, i32) {
    %c0_i32 = arith.constant 0 : i32
    %c0_i32_0 = arith.constant 0 : i32
    return %arg0, %c0_i32 : i32, i32
  }
}

</mosaic_0001>

<bundles_post_ra>
// kernel: tpu_custom_call.1
= control target key start
LH: loop header
LB: loop body
LE: loop exit
PB: predicated region body
PF: predicated region fallthrough
CT: control target
= control target key end

     0   :  { %9 = vsyncpa [#allocation4], 0  ;;  %s253_s0 = inlined_call_operand.<no memory space> [shape: f32[1,1], index: 0, kind: input, shape index: {}]   ;;  %s254_s1 = inlined_call_operand.hbm [shape: f32[16,128], index: 1, kind: input, shape index: {}]   ;;  %s255_s2 = inlined_call_operand.hbm [shape: f32[16,128], index: 2, kind: input, shape index: {}]   ;;  %s256_s3 = inlined_call_operand.hbm [shape: f32[8,128], index: 3, kind: output, shape index: {}]  }
   0x1   :  { %10 = vsyncpa [#allocation7], 0 }
   0x2   :  { %11 = vsyncpa [#allocation5], 0  ;;  %s212_s12 = smov [#allocation3]  }
   0x3   :  { %s25_s13 = sshll.u32 %s212_s12, 4  ;;  %s26_s13 = int_to_ptr.vmem [resolvable:$true] %s25_s13 }
   0x4   :  { %s154_s14 = scalar_lea.vmem %s26_s13, 256  ;;  %p159_p1 = scmp.lt.s32.totalorder %s26_s13, %s26_s13 }
   0x5   :  { %p155_p0 = scmp.ne.s32.totalorder %s26_s13, %s154_s14  ;;  %p160_p2 = scmp.lt.s32.totalorder %s154_s14, %s154_s14 }
   0x7   :  { %p161_p3 = por %p160_p2, %p159_p1 }
   0x9   :  { %p162_p4 = pnand %p161_p3, %p155_p0 }
   0xb   :  { %165 = shalt.err (!%p162_p4)
}
   0xc   :  { %s213_s15 = smov 128   ;;  %s214_s16 = smov 8  }
   0xd   :  { %31 = dma.hbm_to_vmem [thread:$0]  %s254_s1, 256, %s26_s13, [#allocation4], %s213_s15, %s213_s15, %s214_s16  }
   0xe   :  { %s215_s19 = smov [#allocation6]  }
   0xf   :  { %s43_s20 = sshll.u32 %s215_s19, 4  ;;  %s44_s20 = int_to_ptr.vmem [resolvable:$true] %s43_s20 }
  0x10   :  { %s174_s21 = scalar_lea.vmem %s44_s20, 256  ;;  %p179_p6 = scmp.lt.s32.totalorder %s44_s20, %s44_s20 }
  0x11   :  { %p175_p5 = scmp.ne.s32.totalorder %s44_s20, %s174_s21  ;;  %p180_p7 = scmp.lt.s32.totalorder %s174_s21, %s174_s21 }
  0x13   :  { %p181_p8 = por %p180_p7, %p179_p6 }
  0x15   :  { %p182_p9 = pnand %p181_p8, %p175_p5 }
  0x17   :  { %185 = shalt.err (!%p182_p9)
}
  0x18   :  { %49 = dma.hbm_to_vmem [thread:$0]  %s255_s2, 256, %s44_s20, [#allocation7], %s213_s15, %s213_s15, %s214_s16  }
  0x19   :  { %206 = dma.done.wait [#allocation4], 256  }
  0x1a   :  { %207 = vsyncadd [#allocation4], 4294967040  ;;  %v70_v0 = vstv %s253_s0 }
  0x1b   :  { %208 = dma.done.wait [#allocation7], 256  }
  0x1c   :  { %209 = vsyncadd [#allocation7], 4294967040  ;;  %140 = vrcp.f32 %v70_v0  ;;  %v74_v2 = vld [vmem:[#allocation3] sm:$0xff]  ;;  %v75_v3 = vld [vmem:[#allocation3 + $0x8] sm:$0xff]  ;;  %s73_s27 = smul.f32 %s253_s0, %s253_s0  ;;  %s216_s0 = smov [#allocation8]  }
  0x1d   :  { %v76_v4 = vld [vmem:[#allocation6] sm:$0xff]  ;;  %v77_v5 = vld [vmem:[#allocation6 + $0x8] sm:$0xff]  ;;  %s116_s28 = sshll.u32 %s216_s0, 4  ;;  %s117_s28 = int_to_ptr.vmem [resolvable:$true] %s116_s28 }
  0x1e   :  { %v78_v6 = vsub.f32 %v76_v4, %v74_v2  ;;  %v79_v7 = vsub.f32 %v77_v5, %v75_v3  ;;  %v101_v22 = vstv %s73_s27  ;;  %s186_s29 = scalar_lea.vmem %s117_s28, 128  ;;  %p191_p11 = scmp.lt.s32.totalorder %s117_s28, %s117_s28 }
  0x1f   :  { %p187_p10 = scmp.ne.s32.totalorder %s117_s28, %s186_s29  ;;  %p192_p12 = scmp.lt.s32.totalorder %s186_s29, %s186_s29 }
  0x21   :  { %p193_p13 = por %p192_p12, %p191_p11 }
  0x23   :  { %p194_p0 = pnand %p193_p13, %p187_p10 }
  0x29   :  { %v141_v1 = vpop.eup %140 }
  0x2a   :  { %132 = vpush %v141_v1 }
  0x5b   :  { %s133_s1 = spop %132 }
  0x5c   :  { %v80_v8 = vstv %s133_s1 }
  0x5d   :  { %v81_v9 = vmul.f32 %v80_v8, %v78_v6  ;;  %v82_v10 = vmul.f32 %v80_v8, %v79_v7 }
  0x5f   :  { %v83_v11 = vadd.f32 1.0, %v81_v9  ;;  %v84_v12 = vadd.f32 1.0, %v82_v10 }
  0x61   :  { %142 = vrsqrt.f32 %v83_v11  ;;  %vm87_vm0 = vcmp.eq.f32.partialorder %v83_v11, inf  ;;  %v90_v17 = vand.u32 2147483648, %v83_v11  ;;  %vm89_vm1 = vcmp.eq.f32.partialorder %v83_v11, 0.0 }
  0x62   :  { %144 = vrsqrt.f32 %v84_v12  ;;  %vm94_vm2 = vcmp.eq.f32.partialorder %v84_v12, inf  ;;  %v97_v19 = vand.u32 2147483648, %v84_v12  ;;  %vm96_vm3 = vcmp.eq.f32.partialorder %v84_v12, 0.0 }
  0x6e   :  { %v143_v13 = vpop.eup %142 }
  0x6f   :  { %v145_v14 = vpop.eup %144  ;;  %v86_v15 = vmul.f32 %v143_v13, %v83_v11 }
  0x70   :  { %v93_v16 = vmul.f32 %v145_v14, %v84_v12 }
  0x71   :  { %v88_v18 = vsel %vm87_vm0, %v83_v11, %v86_v15 }
  0x72   :  { %v91_v20 = vsel %vm89_vm1, %v90_v17, %v88_v18  ;;  %v95_v21 = vsel %vm94_vm2, %v84_v12, %v93_v16 }
  0x73   :  { %v98_v23 = vsel %vm96_vm3, %v97_v19, %v95_v21  ;;  %v99_v24 = vmul.f32 %v91_v20, %v91_v20 }
  0x74   :  { %v100_v25 = vmul.f32 %v98_v23, %v98_v23 }
  0x75   :  { %v102_v26 = vmul.f32 %v101_v22, %v99_v24 }
  0x76   :  { %v103_v27 = vmul.f32 %v101_v22, %v100_v25 }
  0x77   :  { %v130_v28 = vadd.f32 -1.0, %v102_v26 }
  0x78   :  { %v131_v29 = vadd.f32 -1.0, %v103_v27 }
  0x7a   :  { %v107_v30 = vadd.f32 %v131_v29, %v130_v28 }
  0x7c   :  { %109 = vst [vmem:[#allocation8] sm:$0xff] %v107_v30 }
  0x7d   :  { %197 = shalt.err (!%p194_p0)
}
  0x7e   :  { %119 = dma.vmem_to_hbm [thread:$0]  %s117_s28, 128, %s256_s3, [#allocation5]  }
  0x7f   :  { %210 = dma.done.wait [#allocation5], 128  }
  0x80   :  { %211 = vsyncadd [#allocation5], 4294967168 }
  0x81   :  { %123 = vsyncpa [#allocation4], 1 }
  0x82   :  { %124 = vsyncpa [#allocation7], 1 }
  0x83   :  { %125 = vsyncpa [#allocation5], 1 }

</bundles_post_ra>
